<compile_context>
chip_gen: v7x
topology: tpu7x:2x2x1
jax: 0.10.0
libtpu: 0.0.40
codegen_flags: <defaults>
</compile_context>

<pallas_src>
import functools
import math

import jax
import jax.numpy as jnp
from jax.experimental import pallas as pl
from jax.experimental.pallas import tpu as pltpu


_LANE = 128
_SUBLANE = 8
_MASK_VALUE = -1e30


# ------------------------------ small helpers -------------------------------

def _round_up(x, m):
    return -(-x // m) * m


def _device_vmem_bytes():
    try:
        info = pltpu.get_tpu_info()
        return int(getattr(info, "vmem_capacity_bytes", 64 * 2**20))
    except Exception:
        return 64 * 2**20


def _vmem_limit(est_bytes):
    cap = (3 * _device_vmem_bytes()) // 4        # ~96 MiB v5e/v6e, ~48 MiB v7x
    return int(min(max(2 * est_bytes, 16 * 2**20), cap))


def _phys_bytes(sub, lane, itemsize):
    """VMEM footprint of a (sub, lane) tile including (8,128) layout padding."""
    return (_round_up(max(sub, 1), _SUBLANE)
            * _round_up(max(lane, 1), _LANE) * itemsize)


def _lane_tile(dim):
    """(tile, padded_dim) for a minor (lane) dim.  Prefers 256-multiples so the
    2x256x256 MXU on v6e/v7x stays full-width."""
    for c in (512, 256, 384, 128):
        if dim % c == 0:
            return c, dim
    if dim <= 512:                                # small/awkward dim: one block
        return dim, dim
    p = _round_up(dim, _LANE)
    for c in (512, 256, 384, 128):
        if p % c == 0:
            return c, p
    return _LANE, p


def _sublane_tile(dim):
    """(tile, padded_dim) for a second-minor dim."""
    for c in (512, 256, 128, 64, 32, 16, 8):
        if dim % c == 0:
            return c, dim
    t = 128 if dim >= 128 else _round_up(dim, _SUBLANE)
    return t, _round_up(dim, t)


def _attn_seq_block(n):
    """(block, padded_n) for the q / kv sequence axes of the flash kernel."""
    if n >= 128:
        n_pad = _round_up(n, 128)
        for c in (512, 256, 128):
            if n_pad % c == 0:
                return c, n_pad
    n_pad = _round_up(n, _SUBLANE)
    return n_pad, n_pad


# ------------------------------ linear kernels ------------------------------

def _matmul_kernel(x_ref, w_ref, o_ref, acc_ref):
    @pl.when(pl.program_id(2) == 0)
    def _init():
        acc_ref[...] = jnp.zeros_like(acc_ref)

    acc_ref[...] += jnp.dot(x_ref[...], w_ref[...],
                            preferred_element_type=jnp.float32)

    @pl.when(pl.program_id(2) == pl.num_programs(2) - 1)
    def _store():
        o_ref[...] = acc_ref[...].astype(o_ref.dtype)


def _matmul_bias_kernel(x_ref, w_ref, b_ref, o_ref, acc_ref):
    @pl.when(pl.program_id(2) == 0)
    def _init():
        acc_ref[...] = jnp.zeros_like(acc_ref)

    acc_ref[...] += jnp.dot(x_ref[...], w_ref[...],
                            preferred_element_type=jnp.float32)

    @pl.when(pl.program_id(2) == pl.num_programs(2) - 1)
    def _store():
        o_ref[...] = (acc_ref[...] + b_ref[...].astype(jnp.float32)
                      ).astype(o_ref.dtype)


def linear_pallas(x2d, w, bias=None, *, mxu_bf16=False):
    """y = x2d @ w (+ bias).  x2d: (M, K), w: (K, N), bias: (1, N) or None.
    Non-tile-divisible dims are zero-padded (exact; padded rows/cols sliced)."""
    out_dtype = x2d.dtype
    M, K = x2d.shape
    N = w.shape[1]

    if mxu_bf16 and x2d.dtype == jnp.float32:
        # Optional v6e/v7x speedup: bf16 MXU operands, f32 accumulation.
        x2d = x2d.astype(jnp.bfloat16)
        w = w.astype(jnp.bfloat16)

    tm, Mp = _sublane_tile(M)
    tk, Kp = _lane_tile(K)
    tn, Np = _lane_tile(N)

    if Mp != M or Kp != K:
        x2d = jnp.pad(x2d, ((0, Mp - M), (0, Kp - K)))
    if Kp != K or Np != N:
        w = jnp.pad(w, ((0, Kp - K), (0, Np - N)))
    if bias is not None and Np != N:
        bias = jnp.pad(bias, ((0, 0), (0, Np - N)))

    grid = (Mp // tm, Np // tn, Kp // tk)
    itemsize = x2d.dtype.itemsize
    est = (2 * (_phys_bytes(tm, tk, itemsize) + _phys_bytes(tk, tn, itemsize)
                + _phys_bytes(tm, tn, itemsize) + _phys_bytes(1, tn, itemsize))
           + _phys_bytes(tm, tn, 4))                       # f32 accumulator
    cp = pltpu.CompilerParams(
        dimension_semantics=("parallel", "parallel", "arbitrary"),
        vmem_limit_bytes=_vmem_limit(est),
    )

    x_spec = pl.BlockSpec((tm, tk), lambda i, j, k: (i, k))
    w_spec = pl.BlockSpec((tk, tn), lambda i, j, k: (k, j))
    o_spec = pl.BlockSpec((tm, tn), lambda i, j, k: (i, j))
    scratch = [pltpu.VMEM((tm, tn), jnp.float32)]

    if bias is None:
        out = pl.pallas_call(
            _matmul_kernel,
            out_shape=jax.ShapeDtypeStruct((Mp, Np), out_dtype),
            grid_spec=pltpu.PrefetchScalarGridSpec(
                num_scalar_prefetch=0, grid=grid,
                in_specs=[x_spec, w_spec],
                out_specs=o_spec,
                scratch_shapes=scratch),
            compiler_params=cp,
        )(x2d, w)
    else:
        b_spec = pl.BlockSpec((1, tn), lambda i, j, k: (0, j))
        out = pl.pallas_call(
            _matmul_bias_kernel,
            out_shape=jax.ShapeDtypeStruct((Mp, Np), out_dtype),
            grid_spec=pltpu.PrefetchScalarGridSpec(
                num_scalar_prefetch=0, grid=grid,
                in_specs=[x_spec, w_spec, b_spec],
                out_specs=o_spec,
                scratch_shapes=scratch),
            compiler_params=cp,
        )(x2d, w, bias)

    if Mp != M or Np != N:
        out = out[:M, :N]
    return out


# --------------------------- flash attention core ----------------------------

def _flash_attn_kernel(q_ref, k_ref, v_ref, o_ref, m_sc, l_sc, acc_sc, *,
                       kv_len, block_kv, needs_mask):
    ki = pl.program_id(3)

    @pl.when(ki == 0)
    def _init():
        m_sc[...] = jnp.full_like(m_sc, -jnp.inf)
        l_sc[...] = jnp.zeros_like(l_sc)
        acc_sc[...] = jnp.zeros_like(acc_sc)

    q = q_ref[0, 0]                       # (tq,  d); softmax scale pre-folded
    k = k_ref[0, 0]                       # (tkv, d)
    v = v_ref[0, 0]                       # (tkv, d)

    # scores: contract over last dim of both operands (no materialized k.T)
    s = jax.lax.dot_general(q, k, (((1,), (1,)), ((), ())),
                            preferred_element_type=jnp.float32)   # (tq, tkv)
    if needs_mask:
        kv_idx = ki * block_kv + jax.lax.broadcasted_iota(
            jnp.int32, (1, s.shape[-1]), 1)
        s = jnp.where(kv_idx < kv_len, s, _MASK_VALUE)

    m_prev = m_sc[...]                                              # (tq, 1)
    m_new = jnp.maximum(m_prev, jnp.max(s, axis=-1, keepdims=True))
    alpha = jnp.exp(m_prev - m_new)
    p = jnp.exp(s - m_new)
    l_sc[...] = alpha * l_sc[...] + jnp.sum(p, axis=-1, keepdims=True)
    acc_sc[...] = alpha * acc_sc[...] + jax.lax.dot_general(
        p.astype(v.dtype), v, (((1,), (0,)), ((), ())),
        preferred_element_type=jnp.float32)                         # (tq, d)
    m_sc[...] = m_new

    @pl.when(ki == pl.num_programs(3) - 1)
    def _finalize():
        # TODO(synk): switch to an exact divide if ~1e-3 rel-err from the EUP
        # reciprocal matters for training accuracy.
        inv_l = pl.reciprocal(l_sc[...], approx=True)
        o_ref[0, 0] = (acc_sc[...] * inv_l).astype(o_ref.dtype)


def attention_core_pallas(q, k, v):
    """q, k, v: (b, heads, n, d), softmax scale already folded into q.
    Returns (b, heads, n, d)."""
    b, h, n, d = q.shape
    blk, n_pad = _attn_seq_block(n)
    needs_mask = n_pad != n
    if needs_mask:
        pad = ((0, 0), (0, 0), (0, n_pad - n), (0, 0))
        q = jnp.pad(q, pad)
        k = jnp.pad(k, pad)
        v = jnp.pad(v, pad)
    tq = tkv = blk
    grid = (b, h, n_pad // tq, n_pad // tkv)

    itemsize = q.dtype.itemsize
    est = (2 * (2 * _phys_bytes(tq, d, itemsize)        # q + out blocks (x2 buf)
                + 2 * _phys_bytes(tkv, d, itemsize))    # k + v blocks (x2 buf)
           + 2 * _phys_bytes(tq, 1, 4)                  # m, l scratch (lane-padded)
           + _phys_bytes(tq, d, 4)                      # f32 output accumulator
           + 3 * _phys_bytes(tq, tkv, 4))               # live f32 score temporaries
    cp = pltpu.CompilerParams(
        dimension_semantics=("parallel", "parallel", "parallel", "arbitrary"),
        vmem_limit_bytes=_vmem_limit(est),
    )

    kern = functools.partial(_flash_attn_kernel, kv_len=n, block_kv=tkv,
                             needs_mask=needs_mask)
    q_spec = pl.BlockSpec((1, 1, tq, d), lambda bi, hi, qi, ki: (bi, hi, qi, 0))
    kv_spec = pl.BlockSpec((1, 1, tkv, d), lambda bi, hi, qi, ki: (bi, hi, ki, 0))
    o_spec = pl.BlockSpec((1, 1, tq, d), lambda bi, hi, qi, ki: (bi, hi, qi, 0))

    out = pl.pallas_call(
        kern,
        out_shape=jax.ShapeDtypeStruct((b, h, n_pad, d), q.dtype),
        grid_spec=pltpu.PrefetchScalarGridSpec(
            num_scalar_prefetch=0, grid=grid,
            in_specs=[q_spec, kv_spec, kv_spec],
            out_specs=o_spec,
            scratch_shapes=[
                pltpu.VMEM((tq, 1), jnp.float32),    # running max m
                pltpu.VMEM((tq, 1), jnp.float32),    # running sum l
                pltpu.VMEM((tq, d), jnp.float32),    # output accumulator
            ]),
        compiler_params=cp,
    )(q, k, v)

    if needs_mask:
        out = out[:, :, :n, :]
    return out


# ------------------------------ module wrapper -------------------------------

def init_attention_params(key, dim, heads, dim_head, dtype=jnp.float32):
    """Deterministic init mirroring nn.Linear default (uniform +/- 1/sqrt(fan_in))."""
    inner_dim = heads * dim_head
    k1, k2, k3 = jax.random.split(key, 3)
    bound_qkv = 1.0 / math.sqrt(dim)
    bound_out = 1.0 / math.sqrt(inner_dim)
    return {
        # stored already transposed: (in_features, out_features)
        "w_qkv": jax.random.uniform(k1, (dim, inner_dim * 3), dtype,
                                    minval=-bound_qkv, maxval=bound_qkv),
        "w_out": jax.random.uniform(k2, (inner_dim, dim), dtype,
                                    minval=-bound_out, maxval=bound_out),
        "b_out": jax.random.uniform(k3, (1, dim), dtype,
                                    minval=-bound_out, maxval=bound_out),
    }


def attention_forward(x, params, heads, dim_head, mxu_bf16=False):
    """x: (b, n, dim) -> (b, n, dim)."""
    b, n, dim = x.shape
    inner_dim = heads * dim_head
    project_out = not (heads == 1 and dim_head == dim)
    scale = dim_head ** (-0.5)

    # Fold softmax scale into the Q columns of the fused QKV weight (one tiny
    # (dim, 3*inner) multiply; removes per-kv-step scale work in the kernel).
    w_qkv = params["w_qkv"]
    col_scale = jnp.concatenate(
        [jnp.full((inner_dim,), scale, w_qkv.dtype),
         jnp.ones((2 * inner_dim,), w_qkv.dtype)])
    w_qkv = w_qkv * col_scale[None, :]

    # Fused QKV projection: x streamed from HBM once, one launch.
    x2d = x.reshape(b * n, dim)
    qkv = linear_pallas(x2d, w_qkv, mxu_bf16=mxu_bf16)          # (b*n, 3*inner)

    # 'b n (three h d)' -> (3, b, h, n, d): single XLA reshape+transpose so the
    # flash kernel sees lane-clean (tq, d) tiles with heads on the grid.
    qkv = qkv.reshape(b, n, 3, heads, dim_head).transpose(2, 0, 3, 1, 4)
    q, k, v = qkv[0], qkv[1], qkv[2]

    out = attention_core_pallas(q, k, v)                        # (b, h, n, d)
    out = out.transpose(0, 2, 1, 3).reshape(b * n, inner_dim)   # 'b h n d -> (b n) (h d)'

    if project_out:
        out = linear_pallas(out, params["w_out"], params["b_out"],
                            mxu_bf16=mxu_bf16)                  # Dropout(0.0) == id
        return out.reshape(b, n, dim)
    return out.reshape(b, n, inner_dim)


# -------------------------------- pure-JAX ref --------------------------------

def attention_reference(x, params, heads, dim_head):
    b, n, dim = x.shape
    inner_dim = heads * dim_head
    scale = dim_head ** (-0.5)
    qkv = x @ params["w_qkv"]
    q, k, v = jnp.split(qkv, 3, axis=-1)

    def split_heads(t):
        return jnp.transpose(t.reshape(b, n, heads, dim_head), (0, 2, 1, 3))

    q, k, v = map(split_heads, (q, k, v))
    dots = jnp.einsum("bhid,bhjd->bhij", q, k) * scale
    attn = jax.nn.softmax(dots, axis=-1)
    out = jnp.einsum("bhij,bhjd->bhid", attn, v)
    out = jnp.transpose(out, (0, 2, 1, 3)).reshape(b, n, inner_dim)
    if not (heads == 1 and dim_head == dim):
        out = out @ params["w_out"] + params["b_out"]
    return out


# ----------------------------------- main -------------------------------------

if __name__ == "__main__":
    # Small shapes consistent with the module's forward: x is (b, n, dim).
    batch, seq, dim = 2, 8, 32
    heads, dim_head = 4, 16

    key = jax.random.PRNGKey(0)
    kx, kp = jax.random.split(key)
    x = jax.random.normal(kx, (batch, seq, dim), dtype=jnp.float32)
    params = init_attention_params(kp, dim, heads, dim_head)

    fwd = jax.jit(functools.partial(attention_forward, heads=heads, dim_head=dim_head))
    y = jax.block_until_ready(fwd(x, params))

    assert y.shape == (batch, seq, dim), y.shape
    y_ref = attention_reference(x, params, heads, dim_head)
    assert jnp.allclose(y, y_ref, atol=2e-2, rtol=2e-2), float(
        jnp.max(jnp.abs(y - y_ref)))
    print("KERNEL_OK")
</pallas_src>

<mosaic_0001>
module attributes {stable_mosaic.version = 11 : i64} {
  func.func @_matmul_kernel(%arg0: i32, %arg1: i32, %arg2: i32, %arg3: memref<16x32xf32, #tpu.memory_space<vmem>>, %arg4: memref<32x192xf32, #tpu.memory_space<vmem>>, %arg5: memref<16x192xf32, #tpu.memory_space<vmem>>, %arg6: memref<16x192xf32, #tpu.memory_space<vmem>>) attributes {dimension_semantics = [#tpu.dimension_semantics<parallel>, #tpu.dimension_semantics<parallel>, #tpu.dimension_semantics<arbitrary>], iteration_bounds = array<i64: 1, 1, 1>, scalar_prefetch = 0 : i64, scratch_operands = 1 : i64, tpu.core_type = #tpu.core_type<tc>, window_params = [{transform_indices = @transform_0, window_bounds = array<i64: 16, 32>}, {transform_indices = @transform_1, window_bounds = array<i64: 32, 192>}, {transform_indices = @transform_2, window_bounds = array<i64: 16, 192>}]} {
    %c0_i32 = arith.constant 0 : i32
    %0 = arith.cmpi eq, %arg2, %c0_i32 : i32
    %1 = arith.extui %0 : i1 to i32
    %c0_i32_0 = arith.constant 0 : i32
    %2 = arith.cmpi ne, %1, %c0_i32_0 : i32
    scf.if %2 {
      %cst_10 = arith.constant 0.000000e+00 : f32
      %12 = vector.broadcast %cst_10 : f32 to vector<16x192xf32>
      %c0_11 = arith.constant 0 : index
      %c0_12 = arith.constant 0 : index
      %13 = vector.load %arg6[%c0_11, %c0_12] : memref<16x192xf32, #tpu.memory_space<vmem>>, vector<16x192xf32>
      tpu.vector_store %arg6[%c0_11, %c0_12], %12 {strides = array<i32>} : memref<16x192xf32, #tpu.memory_space<vmem>>, vector<16x192xf32>,
    } else {
    }
    %c0 = arith.constant 0 : index
    %c0_1 = arith.constant 0 : index
    %3 = vector.load %arg6[%c0, %c0_1] : memref<16x192xf32, #tpu.memory_space<vmem>>, vector<16x192xf32>
    %c0_2 = arith.constant 0 : index
    %c0_3 = arith.constant 0 : index
    %4 = vector.load %arg3[%c0_2, %c0_3] : memref<16x32xf32, #tpu.memory_space<vmem>>, vector<16x32xf32>
    %c0_4 = arith.constant 0 : index
    %c0_5 = arith.constant 0 : index
    %5 = vector.load %arg4[%c0_4, %c0_5] : memref<32x192xf32, #tpu.memory_space<vmem>>, vector<32x192xf32>
    %cst = arith.constant dense<0.000000e+00> : vector<16x192xf32>
    %6 = tpu.matmul %4, %5, %cst {dimension_numbers = #tpu.dot_dimension_numbers<[1], [0], [0], [1], [0, 0, 1, 1], [], []>} : vector<16x32xf32>, vector<32x192xf32>, vector<16x192xf32> -> vector<16x192xf32>
    %7 = arith.addf %3, %6 : vector<16x192xf32>
    %c0_6 = arith.constant 0 : index
    %c0_7 = arith.constant 0 : index
    %8 = vector.load %arg6[%c0_6, %c0_7] : memref<16x192xf32, #tpu.memory_space<vmem>>, vector<16x192xf32>
    tpu.vector_store %arg6[%c0_6, %c0_7], %7 {strides = array<i32>} : memref<16x192xf32, #tpu.memory_space<vmem>>, vector<16x192xf32>,
    %c0_i32_8 = arith.constant 0 : i32
    %9 = arith.cmpi eq, %arg2, %c0_i32_8 : i32
    %10 = arith.extui %9 : i1 to i32
    %c0_i32_9 = arith.constant 0 : i32
    %11 = arith.cmpi ne, %10, %c0_i32_9 : i32
    scf.if %11 {
      %c0_10 = arith.constant 0 : index
      %c0_11 = arith.constant 0 : index
      %12 = vector.load %arg6[%c0_10, %c0_11] : memref<16x192xf32, #tpu.memory_space<vmem>>, vector<16x192xf32>
      %c0_12 = arith.constant 0 : index
      %c0_13 = arith.constant 0 : index
      %13 = vector.load %arg5[%c0_12, %c0_13] : memref<16x192xf32, #tpu.memory_space<vmem>>, vector<16x192xf32>
      tpu.vector_store %arg5[%c0_12, %c0_13], %12 {strides = array<i32>} : memref<16x192xf32, #tpu.memory_space<vmem>>, vector<16x192xf32>,
    } else {
    }
    return
  }
  func.func @transform_0(%arg0: i32, %arg1: i32, %arg2: i32) -> (i32, i32) {
    %c0_i32 = arith.constant 0 : i32
    return %arg0, %arg2 : i32, i32
  }
  func.func @transform_1(%arg0: i32, %arg1: i32, %arg2: i32) -> (i32, i32) {
    %c0_i32 = arith.constant 0 : i32
    return %arg2, %arg1 : i32, i32
  }
  func.func @transform_2(%arg0: i32, %arg1: i32, %arg2: i32) -> (i32, i32) {
    %c0_i32 = arith.constant 0 : i32
    return %arg0, %arg1 : i32, i32
  }
}

module attributes {stable_mosaic.version = 11 : i64} {
  func.func @_flash_attn_kernel(%arg0: i32, %arg1: i32, %arg2: i32, %arg3: i32, %arg4: memref<1x1x8x16xf32, #tpu.memory_space<vmem>>, %arg5: memref<1x1x8x16xf32, #tpu.memory_space<vmem>>, %arg6: memref<1x1x8x16xf32, #tpu.memory_space<vmem>>, %arg7: memref<1x1x8x16xf32, #tpu.memory_space<vmem>>, %arg8: memref<8x1xf32, #tpu.memory_space<vmem>>, %arg9: memref<8x1xf32, #tpu.memory_space<vmem>>, %arg10: memref<8x16xf32, #tpu.memory_space<vmem>>) attributes {dimension_semantics = [#tpu.dimension_semantics<parallel>, #tpu.dimension_semantics<parallel>, #tpu.dimension_semantics<parallel>, #tpu.dimension_semantics<arbitrary>], iteration_bounds = array<i64: 2, 4, 1, 1>, scalar_prefetch = 0 : i64, scratch_operands = 3 : i64, tpu.core_type = #tpu.core_type<tc>, window_params = [{transform_indices = @transform_0, window_bounds = array<i64: 1, 1, 8, 16>}, {transform_indices = @transform_1, window_bounds = array<i64: 1, 1, 8, 16>}, {transform_indices = @transform_2, window_bounds = array<i64: 1, 1, 8, 16>}, {transform_indices = @transform_3, window_bounds = array<i64: 1, 1, 8, 16>}]} {
    %c0_i32 = arith.constant 0 : i32
    %0 = arith.cmpi eq, %arg3, %c0_i32 : i32
    %1 = arith.extui %0 : i1 to i32
    %c0_i32_0 = arith.constant 0 : i32
    %2 = arith.cmpi ne, %1, %c0_i32_0 : i32
    scf.if %2 {
      %cst_29 = arith.constant 0xFF800000 : f32
      %35 = vector.broadcast %cst_29 : f32 to vector<8x1xf32>
      %c0_30 = arith.constant 0 : index
      %c0_31 = arith.constant 0 : index
      %36 = vector.load %arg8[%c0_30, %c0_31] : memref<8x1xf32, #tpu.memory_space<vmem>>, vector<8x1xf32>
      tpu.vector_store %arg8[%c0_30, %c0_31], %35 {strides = array<i32>} : memref<8x1xf32, #tpu.memory_space<vmem>>, vector<8x1xf32>,
      %cst_32 = arith.constant 0.000000e+00 : f32
      %37 = vector.broadcast %cst_32 : f32 to vector<8x1xf32>
      %c0_33 = arith.constant 0 : index
      %c0_34 = arith.constant 0 : index
      %38 = vector.load %arg9[%c0_33, %c0_34] : memref<8x1xf32, #tpu.memory_space<vmem>>, vector<8x1xf32>
      tpu.vector_store %arg9[%c0_33, %c0_34], %37 {strides = array<i32>} : memref<8x1xf32, #tpu.memory_space<vmem>>, vector<8x1xf32>,
      %cst_35 = arith.constant 0.000000e+00 : f32
      %39 = vector.broadcast %cst_35 : f32 to vector<8x16xf32>
      %c0_36 = arith.constant 0 : index
      %c0_37 = arith.constant 0 : index
      %40 = vector.load %arg10[%c0_36, %c0_37] : memref<8x16xf32, #tpu.memory_space<vmem>>, vector<8x16xf32>
      tpu.vector_store %arg10[%c0_36, %c0_37], %39 {strides = array<i32>} : memref<8x16xf32, #tpu.memory_space<vmem>>, vector<8x16xf32>,
    } else {
    }
    %c0 = arith.constant 0 : index
    %c0_1 = arith.constant 0 : index
    %c0_2 = arith.constant 0 : index
    %c0_3 = arith.constant 0 : index
    %3 = vector.load %arg4[%c0, %c0_1, %c0_2, %c0_3] : memref<1x1x8x16xf32, #tpu.memory_space<vmem>>, vector<1x1x8x16xf32>
    %4 = vector.shape_cast %3 : vector<1x1x8x16xf32> to vector<8x16xf32>
    %c0_4 = arith.constant 0 : index
    %c0_5 = arith.constant 0 : index
    %c0_6 = arith.constant 0 : index
    %c0_7 = arith.constant 0 : index
    %5 = vector.load %arg5[%c0_4, %c0_5, %c0_6, %c0_7] : memref<1x1x8x16xf32, #tpu.memory_space<vmem>>, vector<1x1x8x16xf32>
    %6 = vector.shape_cast %5 : vector<1x1x8x16xf32> to vector<8x16xf32>
    %c0_8 = arith.constant 0 : index
    %c0_9 = arith.constant 0 : index
    %c0_10 = arith.constant 0 : index
    %c0_11 = arith.constant 0 : index
    %7 = vector.load %arg6[%c0_8, %c0_9, %c0_10, %c0_11] : memref<1x1x8x16xf32, #tpu.memory_space<vmem>>, vector<1x1x8x16xf32>
    %8 = vector.shape_cast %7 : vector<1x1x8x16xf32> to vector<8x16xf32>
    %cst = arith.constant dense<0.000000e+00> : vector<8x8xf32>
    %9 = tpu.matmul %4, %6, %cst {dimension_numbers = #tpu.dot_dimension_numbers<[1], [1], [0], [0], [0, 0, 1, 0], [], []>} : vector<8x16xf32>, vector<8x16xf32>, vector<8x8xf32> -> vector<8x8xf32>
    %c0_12 = arith.constant 0 : index
    %c0_13 = arith.constant 0 : index
    %10 = vector.load %arg8[%c0_12, %c0_13] : memref<8x1xf32, #tpu.memory_space<vmem>>, vector<8x1xf32>
    %cst_14 = arith.constant dense<0xFF800000> : vector<8xf32>
    %11 = vector.multi_reduction <maximumf>, %9, %cst_14 [1] : vector<8x8xf32> to vector<8xf32>
    %12 = vector.shape_cast %11 : vector<8xf32> to vector<8x1xf32>
    %13 = arith.maximumf %10, %12 : vector<8x1xf32>
    %14 = arith.subf %10, %13 : vector<8x1xf32>
    %15 = math.exp %14 : vector<8x1xf32>
    %16 = vector.broadcast %13 : vector<8x1xf32> to vector<8x8xf32>
    %17 = arith.subf %9, %16 : vector<8x8xf32>
    %18 = math.exp %17 : vector<8x8xf32>
    %c0_15 = arith.constant 0 : index
    %c0_16 = arith.constant 0 : index
    %19 = vector.load %arg9[%c0_15, %c0_16] : memref<8x1xf32, #tpu.memory_space<vmem>>, vector<8x1xf32>
    %20 = arith.mulf %15, %19 : vector<8x1xf32>
    %cst_17 = arith.constant dense<0.000000e+00> : vector<8xf32>
    %21 = vector.multi_reduction <add>, %18, %cst_17 [1] : vector<8x8xf32> to vector<8xf32>
    %22 = vector.shape_cast %21 : vector<8xf32> to vector<8x1xf32>
    %23 = arith.addf %20, %22 : vector<8x1xf32>
    %c0_18 = arith.constant 0 : index
    %c0_19 = arith.constant 0 : index
    %24 = vector.load %arg9[%c0_18, %c0_19] : memref<8x1xf32, #tpu.memory_space<vmem>>, vector<8x1xf32>
    tpu.vector_store %arg9[%c0_18, %c0_19], %23 {strides = array<i32>} : memref<8x1xf32, #tpu.memory_space<vmem>>, vector<8x1xf32>,
    %c0_20 = arith.constant 0 : index
    %c0_21 = arith.constant 0 : index
    %25 = vector.load %arg10[%c0_20, %c0_21] : memref<8x16xf32, #tpu.memory_space<vmem>>, vector<8x16xf32>
    %26 = vector.broadcast %15 : vector<8x1xf32> to vector<8x16xf32>
    %27 = arith.mulf %26, %25 : vector<8x16xf32>
    %cst_22 = arith.constant dense<0.000000e+00> : vector<8x16xf32>
    %28 = tpu.matmul %18, %8, %cst_22 {dimension_numbers = #tpu.dot_dimension_numbers<[1], [0], [0], [1], [0, 0, 1, 1], [], []>} : vector<8x8xf32>, vector<8x16xf32>, vector<8x16xf32> -> vector<8x16xf32>
    %29 = arith.addf %27, %28 : vector<8x16xf32>
    %c0_23 = arith.constant 0 : index
    %c0_24 = arith.constant 0 : index
    %30 = vector.load %arg10[%c0_23, %c0_24] : memref<8x16xf32, #tpu.memory_space<vmem>>, vector<8x16xf32>
    tpu.vector_store %arg10[%c0_23, %c0_24], %29 {strides = array<i32>} : memref<8x16xf32, #tpu.memory_space<vmem>>, vector<8x16xf32>,
    %c0_25 = arith.constant 0 : index
    %c0_26 = arith.constant 0 : index
    %31 = vector.load %arg8[%c0_25, %c0_26] : memref<8x1xf32, #tpu.memory_space<vmem>>, vector<8x1xf32>
    tpu.vector_store %arg8[%c0_25, %c0_26], %13 {strides = array<i32>} : memref<8x1xf32, #tpu.memory_space<vmem>>, vector<8x1xf32>,
    %c0_i32_27 = arith.constant 0 : i32
    %32 = arith.cmpi eq, %arg3, %c0_i32_27 : i32
    %33 = arith.extui %32 : i1 to i32
    %c0_i32_28 = arith.constant 0 : i32
    %34 = arith.cmpi ne, %33, %c0_i32_28 : i32
    scf.if %34 {
      %c0_29 = arith.constant 0 : index
      %c0_30 = arith.constant 0 : index
      %35 = vector.load %arg9[%c0_29, %c0_30] : memref<8x1xf32, #tpu.memory_space<vmem>>, vector<8x1xf32>
      %36 = tpu.reciprocal %35 {approx = true} : vector<8x1xf32> -> vector<8x1xf32>
      %c0_31 = arith.constant 0 : index
      %c0_32 = arith.constant 0 : index
      %37 = vector.load %arg10[%c0_31, %c0_32] : memref<8x16xf32, #tpu.memory_space<vmem>>, vector<8x16xf32>
      %38 = vector.broadcast %36 : vector<8x1xf32> to vector<8x16xf32>
      %39 = arith.mulf %37, %38 : vector<8x16xf32>
      %c0_33 = arith.constant 0 : index
      %c0_34 = arith.constant 0 : index
      %c0_35 = arith.constant 0 : index
      %c0_36 = arith.constant 0 : index
      %40 = vector.load %arg7[%c0_33, %c0_34, %c0_35, %c0_36] : memref<1x1x8x16xf32, #tpu.memory_space<vmem>>, vector<1x1x8x16xf32>
      %41 = vector.shape_cast %40 : vector<1x1x8x16xf32> to vector<8x16xf32>
      %42 = vector.shape_cast %39 : vector<8x16xf32> to vector<1x1x8x16xf32>
      tpu.vector_store %arg7[%c0_33, %c0_34, %c0_35, %c0_36], %42 {strides = array<i32>} : memref<1x1x8x16xf32, #tpu.memory_space<vmem>>, vector<1x1x8x16xf32>,
    } else {
    }
    return
  }
  func.func @transform_0(%arg0: i32, %arg1: i32, %arg2: i32, %arg3: i32) -> (i32, i32, i32, i32) {
    %c0_i32 = arith.constant 0 : i32
    %c0_i32_0 = arith.constant 0 : i32
    return %arg0, %arg1, %arg2, %c0_i32 : i32, i32, i32, i32
  }
  func.func @transform_1(%arg0: i32, %arg1: i32, %arg2: i32, %arg3: i32) -> (i32, i32, i32, i32) {
    %c0_i32 = arith.constant 0 : i32
    %c0_i32_0 = arith.constant 0 : i32
    return %arg0, %arg1, %arg3, %c0_i32 : i32, i32, i32, i32
  }
  func.func @transform_2(%arg0: i32, %arg1: i32, %arg2: i32, %arg3: i32) -> (i32, i32, i32, i32) {
    %c0_i32 = arith.constant 0 : i32
    %c0_i32_0 = arith.constant 0 : i32
    return %arg0, %arg1, %arg3, %c0_i32 : i32, i32, i32, i32
  }
  func.func @transform_3(%arg0: i32, %arg1: i32, %arg2: i32, %arg3: i32) -> (i32, i32, i32, i32) {
    %c0_i32 = arith.constant 0 : i32
    %c0_i32_0 = arith.constant 0 : i32
    return %arg0, %arg1, %arg2, %c0_i32 : i32, i32, i32, i32
  }
}

module attributes {stable_mosaic.version = 11 : i64} {
  func.func @_matmul_bias_kernel(%arg0: i32, %arg1: i32, %arg2: i32, %arg3: memref<16x64xf32, #tpu.memory_space<vmem>>, %arg4: memref<64x32xf32, #tpu.memory_space<vmem>>, %arg5: memref<1x32xf32, #tpu.memory_space<vmem>>, %arg6: memref<16x32xf32, #tpu.memory_space<vmem>>, %arg7: memref<16x32xf32, #tpu.memory_space<vmem>>) attributes {dimension_semantics = [#tpu.dimension_semantics<parallel>, #tpu.dimension_semantics<parallel>, #tpu.dimension_semantics<arbitrary>], iteration_bounds = array<i64: 1, 1, 1>, scalar_prefetch = 0 : i64, scratch_operands = 1 : i64, tpu.core_type = #tpu.core_type<tc>, window_params = [{transform_indices = @transform_0, window_bounds = array<i64: 16, 64>}, {transform_indices = @transform_1, window_bounds = array<i64: 64, 32>}, {transform_indices = @transform_2, window_bounds = array<i64: 1, 32>}, {transform_indices = @transform_3, window_bounds = array<i64: 16, 32>}]} {
    %c0_i32 = arith.constant 0 : i32
    %0 = arith.cmpi eq, %arg2, %c0_i32 : i32
    %1 = arith.extui %0 : i1 to i32
    %c0_i32_0 = arith.constant 0 : i32
    %2 = arith.cmpi ne, %1, %c0_i32_0 : i32
    scf.if %2 {
      %cst_10 = arith.constant 0.000000e+00 : f32
      %12 = vector.broadcast %cst_10 : f32 to vector<16x32xf32>
      %c0_11 = arith.constant 0 : index
      %c0_12 = arith.constant 0 : index
      %13 = vector.load %arg7[%c0_11, %c0_12] : memref<16x32xf32, #tpu.memory_space<vmem>>, vector<16x32xf32>
      tpu.vector_store %arg7[%c0_11, %c0_12], %12 {strides = array<i32>} : memref<16x32xf32, #tpu.memory_space<vmem>>, vector<16x32xf32>,
    } else {
    }
    %c0 = arith.constant 0 : index
    %c0_1 = arith.constant 0 : index
    %3 = vector.load %arg7[%c0, %c0_1] : memref<16x32xf32, #tpu.memory_space<vmem>>, vector<16x32xf32>
    %c0_2 = arith.constant 0 : index
    %c0_3 = arith.constant 0 : index
    %4 = vector.load %arg3[%c0_2, %c0_3] : memref<16x64xf32, #tpu.memory_space<vmem>>, vector<16x64xf32>
    %c0_4 = arith.constant 0 : index
    %c0_5 = arith.constant 0 : index
    %5 = vector.load %arg4[%c0_4, %c0_5] : memref<64x32xf32, #tpu.memory_space<vmem>>, vector<64x32xf32>
    %cst = arith.constant dense<0.000000e+00> : vector<16x32xf32>
    %6 = tpu.matmul %4, %5, %cst {dimension_numbers = #tpu.dot_dimension_numbers<[1], [0], [0], [1], [0, 0, 1, 1], [], []>} : vector<16x64xf32>, vector<64x32xf32>, vector<16x32xf32> -> vector<16x32xf32>
    %7 = arith.addf %3, %6 : vector<16x32xf32>
    %c0_6 = arith.constant 0 : index
    %c0_7 = arith.constant 0 : index
    %8 = vector.load %arg7[%c0_6, %c0_7] : memref<16x32xf32, #tpu.memory_space<vmem>>, vector<16x32xf32>
    tpu.vector_store %arg7[%c0_6, %c0_7], %7 {strides = array<i32>} : memref<16x32xf32, #tpu.memory_space<vmem>>, vector<16x32xf32>,
    %c0_i32_8 = arith.constant 0 : i32
    %9 = arith.cmpi eq, %arg2, %c0_i32_8 : i32
    %10 = arith.extui %9 : i1 to i32
    %c0_i32_9 = arith.constant 0 : i32
    %11 = arith.cmpi ne, %10, %c0_i32_9 : i32
    scf.if %11 {
      %c0_10 = arith.constant 0 : index
      %c0_11 = arith.constant 0 : index
      %12 = vector.load %arg7[%c0_10, %c0_11] : memref<16x32xf32, #tpu.memory_space<vmem>>, vector<16x32xf32>
      %c0_12 = arith.constant 0 : index
      %c0_13 = arith.constant 0 : index
      %13 = vector.load %arg5[%c0_12, %c0_13] : memref<1x32xf32, #tpu.memory_space<vmem>>, vector<1x32xf32>
      %14 = vector.broadcast %13 : vector<1x32xf32> to vector<16x32xf32>
      %15 = arith.addf %12, %14 : vector<16x32xf32>
      %c0_14 = arith.constant 0 : index
      %c0_15 = arith.constant 0 : index
      %16 = vector.load %arg6[%c0_14, %c0_15] : memref<16x32xf32, #tpu.memory_space<vmem>>, vector<16x32xf32>
      tpu.vector_store %arg6[%c0_14, %c0_15], %15 {strides = array<i32>} : memref<16x32xf32, #tpu.memory_space<vmem>>, vector<16x32xf32>,
    } else {
    }
    return
  }
  func.func @transform_0(%arg0: i32, %arg1: i32, %arg2: i32) -> (i32, i32) {
    %c0_i32 = arith.constant 0 : i32
    return %arg0, %arg2 : i32, i32
  }
  func.func @transform_1(%arg0: i32, %arg1: i32, %arg2: i32) -> (i32, i32) {
    %c0_i32 = arith.constant 0 : i32
    return %arg2, %arg1 : i32, i32
  }
  func.func @transform_2(%arg0: i32, %arg1: i32, %arg2: i32) -> (i32, i32) {
    %c0_i32 = arith.constant 0 : i32
    %c0_i32_0 = arith.constant 0 : i32
    return %c0_i32, %arg1 : i32, i32
  }
  func.func @transform_3(%arg0: i32, %arg1: i32, %arg2: i32) -> (i32, i32) {
    %c0_i32 = arith.constant 0 : i32
    return %arg0, %arg1 : i32, i32
  }
}

</mosaic_0001>

<bundles_post_ra>
// kernel: attention_forward.4
= control target key start
LH: loop header
LB: loop body
LE: loop exit
PB: predicated region body
PF: predicated region fallthrough
CT: control target
= control target key end

     0   :  { %s824_s12 = smov 0   ;;  %s826_s13 = smov 0   ;;  %s899_s0 = inlined_call_operand.vmem [shape: f32[2,4,8,16], index: 0, kind: input, shape index: {}]   ;;  %s900_s1 = inlined_call_operand.vmem [shape: f32[2,4,8,16], index: 1, kind: input, shape index: {}]   ;;  %s901_s2 = inlined_call_operand.vmem [shape: f32[2,4,8,16], index: 2, kind: input, shape index: {}]   ;;  %s902_s3 = inlined_call_operand.vmem [shape: f32[2,4,8,16], index: 3, kind: output, shape index: {}]  }
   0x1   :  { %s828_s14 = smov 0   ;;  %s830_s15 = smov 0  }
   0x2   :  { %s832_s16 = smov 0  }
   0x3 LB: > { %s35_s17 = sadd.s32 1, %s790_s14  ;;  %s39_s18 = sadd.s32 1, %s794_s15  ;;  %s798_s16 = sphi %s832_s16, %s13_s16   ;;  %s794_s15 = sphi %s830_s15, %s906_s15   ;;  %s790_s14 = sphi %s828_s14, %s905_s14   ;;  %s786_s13 = sphi %s826_s13, %s904_s13   ;;  %s782_s12 = sphi %s824_s12, %s903_s12  }
   0x4   : > { %p37_p0 = scmp.ge.s32.totalorder %s35_s17, 4  ;;  %p680_p1 = scmp.ge.s32.totalorder %s798_s16, 1 }
   0x5   : > { %p217_p2 = scmp.lt.s32.totalorder %s798_s16, 9 }
   0x6   : > { %s908_s17 = smov (%p37_p0, %s35_s17), 0  ;;  %s910_s18 = smov (!%p37_p0, %s39_s18), %s794_s15 }
   0x7   : > { %p218_p3 = pnand %p680_p1, %p217_p2  ;;  %p41_p4 = scmp.ge.s32.totalorder %s910_s18, 2 }
   0x8   : > { %p275_p5 = scmp.lt.s32.totalorder (!%p218_p3), %s786_s13, 1  ;;  %p277_p6 = scmp.lt.s32.totalorder (!%p218_p3), %s782_s12, 3  ;;  %vm326_vm0 = vcmask (!%p218_p3), 130048   ;;  %v800_v0 = vmov (!%p218_p3), 0.0   ;;  %vm801_vm1 = vmmov (!%p218_p3), 0   ;;  %vm323_vm2 = vcmask (!%p218_p3), 7168  }
   0x9   : > { %s912_s18 = smov (%p41_p4, %s910_s18), 0  ;;  %221 = sbr.rel (%p218_p3) target bundleno = 820 (0x334), region = 32 }
   0xa   : > { %698 = vmatprep.subr.mxu0 (!%p218_p3), %v800_v0  ;;  %327 = vst.msk [vmem:[#allocation4] sm:$0xff] (!%p218_p3), %vm326_vm0, %v800_v0  ;;  %700 = vmatprep.mubr.msk.f32.mxu0 (!%p218_p3), %vm801_vm1, %v800_v0  ;;  %v802_v3 = vmov (!%p218_p3), -inf   ;;  %vm409_vm3 = vcmask (!%p218_p3), 64512   ;;  %v803_v7 = vmov (!%p218_p3), 0  }
   0xb   : > { %703 = vmatprep.subr.mxu1 (!%p218_p3), %v800_v0  ;;  %705 = vmatprep.mubr.msk.f32.mxu1 (!%p218_p3), %vm801_vm1, %v800_v0  ;;  %324 = vst.msk [vmem:[#allocation2] sm:$0xff] (!%p218_p3), %vm323_vm2, %v802_v3  ;;  %325 = vst.msk [vmem:[#allocation3] sm:$0xff] (!%p218_p3), %vm323_vm2, %v800_v0 }
   0xc   : > { %752 = vset.pattern.permute.xlu0 (!%p218_p3), %v803_v7  ;;  %753 = vset.pattern.permute.xlu1 (!%p218_p3), %v803_v7 }
  0x10   : > { %s914_s13 = smov (!%p275_p5, %s786_s13), 1  ;;  %s916_s12 = smov (!%p277_p6, %s782_s12), 3 }
  0x11   : > { %s681_s19 = sshll.u32 %s914_s13, 2  ;;  %v433_v26 = vld [vmem:[#allocation4] sm:$0xff] }
  0x12   : > { %s283_s20 = sadd.s32 %s681_s19, %s916_s12  ;;  %v408_v8 = vld [vmem:[#allocation2] sm:$0xff]  ;;  %v425_v20 = vld [vmem:[#allocation3] sm:$0xff] }
  0x13   : > { %s855_s21 = sshll.u32 %s283_s20, 3 }
  0x14   : > { %s296_s24 = scalar_lea.vmem %s900_s1, %s855_s21  ;;  %s285_s27 = scalar_lea.vmem %s899_s0, %s855_s21 }
  0x15   : > { %v329_v1 = vld [vmem:[%s296_s24] sm:$0xff]  ;;  %s307_s30 = scalar_lea.vmem %s901_s2, %s855_s21  ;;  %s318_s6 = scalar_lea.vmem %s902_s3, %s855_s21 }
  0x16   : > { %699 = vmatpush3.xpose.msk.msra.mxu0 %vm326_vm0, %v329_v1  ;;  %v328_v2 = vld [vmem:[%s285_s27] sm:$0xff] }
  0x17   : > { %v330_v12 = vld [vmem:[%s307_s30] sm:$0xff] }
  0x18   : > { %704 = vmatpush3.msra.mxu1 %v330_v12 }
  0x19   : > { %701 = vmatmul.mubr.msk.f32.vlgmr.msra.gmra.mrb[0].mxu0 %vm326_vm0, %v328_v2 }
  0xec   : > { %v404_v4 = vpop.f32.mrb[0].mxu0 }
  0xed   : > { %v702_v5 = vpop.f32.mrb[1].mxu0  ;;  %v410_v6 = vsel %vm409_vm3, %v404_v4, -inf }
  0xee   : > { %411 = vmax.xlane.f32.xlu0 %v410_v6 }
 0x17b   : > { %v412_v9 = vpop.xlane.xlu0 %411 }
 0x17c   : > { %v413_v10 = vmax.f32 %v408_v8, %v412_v9 }
 0x17e   : > { %v414_v11 = vsub.f32 %v408_v8, %v413_v10  ;;  %515 = vst.msk [vmem:[#allocation2] sm:$0xff] %vm323_vm2, %v413_v10  ;;  %419 = vperm.xlu0 %752, %v413_v10  }
 0x180   : > { %v415_v18 = vmul.f32 1.442695, %v414_v11 }
 0x1fd   : > { %v420_v13 = vpop.permute.xlu0 %419 }
 0x1fe   : > { %v422_v14 = vsub.f32 %v404_v4, %v420_v13 }
 0x200   : > { %v423_v15 = vmul.f32 1.442695, %v422_v14 }
 0x202   : > { %754 = vpow2.f32 %v423_v15 }
 0x203   : > { %756 = vpow2.f32 %v415_v18 }
 0x20c   : > { %v755_v16 = vpop.eup %754 }
 0x20d   : > { %706 = vmatmul.mubr.msk.f32.vlgmr.msra.gmra.mrb[0].mxu1 %vm409_vm3, %v755_v16  ;;  %v427_v17 = vsel %vm409_vm3, %v755_v16, 0.0  ;;  %v757_v19 = vpop.eup %756 }
 0x20e   : > { %428 = vadd.xlane.f32.xlu1 %v427_v17  ;;  %v426_v21 = vmul.f32 %v757_v19, %v425_v20 }
 0x21f   : > { %436 = vperm.xlu1 %753, %v757_v19  }
 0x29b   : > { %v429_v22 = vpop.xlane.xlu1 %428 }
 0x29c   : > { %v430_v23 = vadd.f32 %v429_v22, %v426_v21 }
 0x29e   : > { %432 = vst.msk [vmem:[#allocation3] sm:$0xff] %vm323_vm2, %v430_v23 }
 0x29f   : > { %v437_v27 = vpop.permute.xlu1 %436 }
 0x2a0   : > { %v439_v28 = vmul.f32 %v437_v27, %v433_v26 }
 0x2a5   : > { %v519_v24 = vld [vmem:[#allocation3] sm:$0xff] }
 0x2a6   : > { %758 = vrcp.f32 %v519_v24 }
 0x2b0   : > { %v759_v25 = vpop.eup %758 }
 0x2b1   : > { %524 = vperm.xlu1 %753, %v759_v25  }
 0x2e0   : > { %v509_v29 = vpop.f32.mrb[0].mxu1 }
 0x2e1   : > { %v513_v30 = vadd.f32 %v509_v29, %v439_v28  ;;  %v707_v31 = vpop.f32.mrb[1].mxu1 }
 0x2e3   : > { %514 = vst.msk [vmem:[#allocation4] sm:$0xff] %vm326_vm0, %v513_v30 }
 0x2ea   : > { %v521_v32 = vld [vmem:[#allocation4] sm:$0xff] }
 0x330   : > { %v525_v33 = vpop.permute.xlu1 %524 }
 0x331   : > { %v527_v34 = vmul.f32 %v525_v33, %v521_v32 }
 0x333   : > { %528 = vst.msk [vmem:[%s318_s6] sm:$0xff] %vm326_vm0, %v527_v34 }
 0x334 PF: > { %s13_s16 = sadd.s32 1, %s798_s16   ;;  %s903_s12 = smov %s790_s14 }
 0x335   : > { %p10_p7 = scmp.ge.s32.totalorder %s13_s16, 10   ;;  %s904_s13 = smov %s794_s15 }
 0x336   : > { %s905_s14 = smov %s908_s17  ;;  %s906_s15 = smov %s912_s18 }
 0x337   :  { %12 = sbr.rel (!%p10_p7) target bundleno = 3 (0x3), region = 76 }

// kernel: attention_forward.3
= control target key start
LH: loop header
LB: loop body
LE: loop exit
PB: predicated region body
PF: predicated region fallthrough
CT: control target
= control target key end

     0   :  { %v157_v3 = vmov 0.0   ;;  %vm34_vm0 = vcmask 261120   ;;  %vm16_vm1 = vcmask 523264   ;;  %s221_s1 = inlined_call_operand.vmem [shape: f32[32,192], index: 1, kind: input, shape index: {}]   ;;  %s222_s0 = inlined_call_operand.vmem [shape: f32[16,32], index: 0, kind: input, shape index: {}]   ;;  %s223_s2 = inlined_call_operand.vmem [shape: f32[16,192], index: 2, kind: output, shape index: {}]  }
   0x1   :  { %v27_v0 = vld [vmem:[%s221_s1 + $0x8] sm:$0xff]  ;;  %v29_v1 = vld [vmem:[%s221_s1 + $0x18] sm:$0xff]  ;;  %v26_v2 = vld [vmem:[%s221_s1] sm:$0xff]  ;;  %105 = vmatprep.mubr.f32.mxu0 %v157_v3  ;;  %111 = vmatprep.mubr.f32.mxu1 %v157_v3  ;;  %17 = vst.msk [vmem:[#allocation2 + $0x8] sm:$0xff] %vm16_vm1, %v157_v3 }
   0x2   :  { %v144_v4 = vpack.c.bf16 %v29_v1, %v27_v0  ;;  %v28_v5 = vld [vmem:[%s221_s1 + $0x10] sm:$0xff]  ;;  %v31_v6 = vld [vmem:[%s221_s1 + $0x28] sm:$0xff]  ;;  %v33_v7 = vld [vmem:[%s221_s1 + $0x38] sm:$0xff]  ;;  %19 = vst.msk [vmem:[#allocation2 + $0x18] sm:$0xff] %vm16_vm1, %v157_v3 }
   0x3   :  { %v146_v8 = vpack.c.bf16 %v28_v5, %v26_v2  ;;  %v148_v9 = vpack.c.bf16 %v33_v7, %v31_v6  ;;  %v30_v10 = vld [vmem:[%s221_s1 + $0x20] sm:$0xff]  ;;  %v32_v11 = vld [vmem:[%s221_s1 + $0x30] sm:$0xff]  ;;  %v25_v14 = vld [vmem:[%s222_s0 + $0x8] sm:$0xff] }
   0x4   :  { %145 = vmatprep.subr.bf16.mxu0 %v144_v4  ;;  %152 = vmatprep.subr.bf16.mxu1 %v144_v4  ;;  %v150_v12 = vpack.c.bf16 %v32_v11, %v30_v10  ;;  %v24_v13 = vld [vmem:[%s222_s0] sm:$0xff] }
   0x5   :  { %147 = vmatpush1.bf16.msra.mxu0 %v146_v8  ;;  %154 = vmatpush1.bf16.msra.mxu1 %v146_v8 }
   0x6   :  { %149 = vmatprep.subr.bf16.mxu0 %v148_v9  ;;  %153 = vmatprep.subr.bf16.mxu1 %v148_v9 }
   0x8   :  { %v21_v15 = vld [vmem:[#allocation2 + $0x8] sm:$0xff] }
   0x9   :  { %151 = vmatpush1.bf16.msra.mxu0 %v150_v12  ;;  %155 = vmatpush1.bf16.msra.mxu1 %v150_v12  ;;  %v23_v16 = vld [vmem:[#allocation2 + $0x18] sm:$0xff] }
   0xc   :  { %142 = vmatmul.mubr.msk.f32.vlgmr.msra.gmra.mrb[0].mxu0 %vm34_vm0, %v24_v13  ;;  %143 = vmatmul.mubr.msk.f32.vlgmr.msra.gmra.mrb[0].mxu1 %vm34_vm0, %v25_v14 }
  0xdf   :  { %v107_v17 = vpop.f32.mrb[0].mxu0  ;;  %v113_v18 = vpop.f32.mrb[0].mxu1 }
  0xe0   :  { %v109_v19 = vpop.f32.mrb[1].mxu0  ;;  %v115_v20 = vpop.f32.mrb[1].mxu1  ;;  %134 = vst [vmem:[%s223_s2] sm:$0xff] %v107_v17  ;;  %136 = vst [vmem:[%s223_s2 + $0x10] sm:$0xff] %v113_v18 }
  0xe1   :  { %v119_v21 = vadd.f32 %v109_v19, %v21_v15  ;;  %v121_v22 = vadd.f32 %v115_v20, %v23_v16 }
  0xe3   :  { %124 = vst.msk [vmem:[#allocation2 + $0x8] sm:$0xff] %vm16_vm1, %v119_v21  ;;  %126 = vst.msk [vmem:[#allocation2 + $0x18] sm:$0xff] %vm16_vm1, %v121_v22 }
  0xea   :  { %v131_v23 = vld [vmem:[#allocation2 + $0x8] sm:$0xff]  ;;  %v133_v24 = vld [vmem:[#allocation2 + $0x18] sm:$0xff] }
  0xeb   :  { %135 = vst.msk [vmem:[%s223_s2 + $0x8] sm:$0xff] %vm16_vm1, %v131_v23  ;;  %137 = vst.msk [vmem:[%s223_s2 + $0x18] sm:$0xff] %vm16_vm1, %v133_v24 }

// kernel: attention_forward.5
= control target key start
LH: loop header
LB: loop body
LE: loop exit
PB: predicated region body
PF: predicated region fallthrough
CT: control target
= control target key end

     0   :  { %vm34_vm0 = vcmask 523264   ;;  %vm19_vm1 = vcmask 261120   ;;  %v229_v5 = vmov 0.0   ;;  %s306_s0 = inlined_call_operand.vmem [shape: f32[16,64], index: 0, kind: input, shape index: {}]   ;;  %s307_s1 = inlined_call_operand.vmem [shape: f32[64,32], index: 1, kind: input, shape index: {}]   ;;  %s308_s2 = inlined_call_operand.vmem [shape: f32[1,32], index: 2, kind: input, shape index: {}]   ;;  %s309_s3 = inlined_call_operand.hbm [shape: f32[16,32], index: 3, kind: output, shape index: {}]  }
   0x1   :  { %v26_v0 = vld [vmem:[%s307_s1] sm:$0xff]  ;;  %v27_v1 = vld [vmem:[%s307_s1 + $0x8] sm:$0xff]  ;;  %v28_v2 = vld [vmem:[%s307_s1 + $0x10] sm:$0xff]  ;;  %21 = vst.msk [vmem:[#allocation2 + $0x8] sm:$0xff] %vm19_vm1, %v229_v5 }
   0x2   :  { %v185_v3 = vpack.c.bf16 %v27_v1, %v26_v0  ;;  %v29_v4 = vld [vmem:[%s307_s1 + $0x18] sm:$0xff]  ;;  %20 = vst.msk [vmem:[#allocation2] sm:$0xff] %vm19_vm1, %v229_v5  ;;  %v30_v7 = vld [vmem:[%s307_s1 + $0x20] sm:$0xff]  ;;  %v31_v8 = vld [vmem:[%s307_s1 + $0x28] sm:$0xff] }
   0x3   :  { %v189_v6 = vpack.c.bf16 %v29_v4, %v28_v2  ;;  %v24_v9 = vld [vmem:[%s306_s0] sm:$0xff] }
   0x4   :  { %186 = vmatprep.subr.bf16.mxu0 %v185_v3  ;;  %182 = vmatprep.mubr.msk.f32.mxu0 %vm34_vm0, %v24_v9 }
   0x5   :  { %8 = vsyncpa [#allocation4], 0  ;;  %188 = vmatpush3.bf16.msra.mxu0 %v185_v3  ;;  %v193_v10 = vpack.c.bf16 %v31_v8, %v30_v7  ;;  %v32_v11 = vld [vmem:[%s307_s1 + $0x30] sm:$0xff]  ;;  %v33_v12 = vld [vmem:[%s307_s1 + $0x38] sm:$0xff]  ;;  %s230_s6 = smov [#allocation3]  }
   0x6   :  { %190 = vmatprep.subr.bf16.mxu0 %v189_v6  ;;  %v197_v13 = vpack.c.bf16 %v33_v12, %v32_v11  ;;  %v25_v14 = vld [vmem:[%s306_s0 + $0x8] sm:$0xff]  ;;  %v155_v21 = vld [vmem:[%s308_s2] ss:$0 sm:$0xff]  ;;  %s142_s7 = sshll.u32 %s230_s6, 4  ;;  %s143_s7 = int_to_ptr.vmem [resolvable:$true] %s142_s7 }
   0x7   :  { %s205_s0 = scalar_lea.vmem %s143_s7, 256  ;;  %p210_p1 = scmp.lt.s32.totalorder %s143_s7, %s143_s7 }
   0x8   :  { %v23_v15 = vld [vmem:[#allocation2 + $0x8] sm:$0xff]  ;;  %p206_p0 = scmp.ne.s32.totalorder %s143_s7, %s205_s0  ;;  %p211_p2 = scmp.lt.s32.totalorder %s205_s0, %s205_s0 }
   0x9   :  { %192 = vmatpush3.bf16.msra.mxu0 %v189_v6  ;;  %v22_v16 = vld [vmem:[#allocation2] sm:$0xff] }
   0xa   :  { %194 = vmatprep.subr.bf16.mxu0 %v193_v10  ;;  %p212_p3 = por %p211_p2, %p210_p1 }
   0xc   :  { %p213_p4 = pnand %p212_p3, %p206_p0 }
   0xd   :  { %196 = vmatpush3.bf16.msra.mxu0 %v193_v10 }
   0xe   :  { %198 = vmatprep.subr.bf16.mxu0 %v197_v13 }
  0x11   :  { %200 = vmatpush3.bf16.msra.mxu0 %v197_v13 }
  0x14   :  { %183 = vmatmul.mubr.msk.f32.vlgmr.msra.gmra.mrb[0].mxu0 %vm34_vm0, %v25_v14 }
  0xe7   :  { %v184_v17 = vpop.f32.mrb[0].mxu0 }
  0xe8   :  { %v117_v18 = vadd.f32 %v184_v17, %v23_v15  ;;  %v107_v19 = vpop.f32.mrb[1].mxu0 }
  0xe9   :  { %v116_v20 = vadd.f32 %v107_v19, %v22_v16 }
  0xea   :  { %120 = vst.msk [vmem:[#allocation2 + $0x8] sm:$0xff] %vm19_vm1, %v117_v18 }
  0xeb   :  { %119 = vst.msk [vmem:[#allocation2] sm:$0xff] %vm19_vm1, %v116_v20 }
  0xf1   :  { %v125_v22 = vld [vmem:[#allocation2 + $0x8] sm:$0xff] }
  0xf2   :  { %v124_v23 = vld [vmem:[#allocation2] sm:$0xff]  ;;  %v134_v24 = vadd.f32 %v155_v21, %v125_v22 }
  0xf3   :  { %v133_v25 = vadd.f32 %v155_v21, %v124_v23 }
  0xf4   :  { %136 = vst.msk [vmem:[#allocation3 + $0x8] sm:$0xff] %vm19_vm1, %v134_v24 }
  0xf5   :  { %135 = vst.msk [vmem:[#allocation3] sm:$0xff] %vm19_vm1, %v133_v25 }
  0xf6   :  { %216 = shalt.err (!%p213_p4)
}
  0xf7   :  { %s217_s9 = scalar_lea.hbm %s309_s3, 256 }
  0xf8   :  { %p218_p5 = scmp.ne.s32.totalorder %s309_s3, %s217_s9  ;;  %p221_p6 = scmp.lt.u32.totalorder %s217_s9, %s309_s3 }
  0xfa   :  { %p223_p7 = pnand %p221_p6, %p218_p5 }
  0xfc   :  { %226 = shalt.err (!%p223_p7)
}
  0xfd   :  { %s231_s14 = smov 128   ;;  %s232_s15 = smov 8  }
  0xfe   :  { %148 = dma.vmem_to_hbm [thread:$0]  %s143_s7, 256, %s309_s3, [#allocation4], %s231_s14, %s231_s14, %s232_s15  }
  0xff   :  { %227 = dma.done.wait [#allocation4], 256  }
 0x100   :  { %228 = vsyncadd [#allocation4], 4294967040 }
 0x101   :  { %152 = vsyncpa [#allocation4], 1 }

</bundles_post_ra>
